<compile_context>
chip_gen: v7x
topology: tpu7x:2x2x1
jax: 0.10.0
libtpu: 0.0.40
codegen_flags: <defaults>
</compile_context>

<pallas_src>
import math

import jax
import jax.numpy as jnp
from jax.experimental import pallas as pl
from jax.experimental.pallas import tpu as pltpu


def _noise_add_kernel(scale_ref, x_ref, bits_ref, o_ref):
    """out = x + z * scale, z ~ N(0,1) via Box-Muller from 24-bit uniforms."""
    scale = scale_ref[0]                       # scalar: ratio * global_max
    half = x_ref.shape[0] // 2                 # static; block rows are even

    inv24 = jnp.float32(1.0 / (1 << 24))
    two_pi = jnp.float32(2.0 * math.pi)

    # Top 24 bits of each uint32 -> uniform mantissas (one draw per element).
    m1 = (bits_ref[:half, :] >> 8).astype(jnp.int32).astype(jnp.float32)
    m2 = (bits_ref[half:, :] >> 8).astype(jnp.int32).astype(jnp.float32)
    u1 = (m1 + 1.0) * inv24                    # (0, 1]  -> log(u1) finite
    u2 = m2 * inv24                            # [0, 1)

    # Box-Muller using BOTH branches: each (u1, u2) pair yields two
    # independent normals -> 2 EUP transcendentals per output element.
    r = jnp.sqrt(-2.0 * jnp.log(u1))
    theta = two_pi * u2
    z0 = r * jnp.cos(theta)
    z1 = r * jnp.sin(theta)

    o_ref[:half, :] = x_ref[:half, :] + z0 * scale
    o_ref[half:, :] = x_ref[half:, :] + z1 * scale


def _choose_block_rows(rows, length, target_bytes=1 << 20):
    """~1 MiB f32 blocks, rows a multiple of 16 (keeps halves sublane-aligned).

    1 MiB blocks -> ~6 MiB of double-buffered VMEM for x/bits/out, which fits
    the default scoped VMEM on v5e (16 MiB) and leaves headroom on v6e/v7x.
    """
    tb = max(16, (target_bytes // (4 * length)) // 16 * 16)
    return min(rows, tb)


def gaussian_noise_2d(x, ratio, seed=0):
    """JAX/Pallas equivalent of GaussianNoise2D.forward (x: (B, n_bins, length))."""
    x = x.astype(jnp.float32)
    orig_shape = x.shape

    # Global max over all elements (XLA reduce; bandwidth-bound and optimal).
    xmax = jnp.max(x)
    scale = (jnp.float32(ratio) * xmax).reshape(1)   # (1,) f32, scalar-prefetched

    length = orig_shape[-1]
    rows = math.prod(orig_shape[:-1])
    x2 = x.reshape(rows, length)

    # Pad rows to a multiple of 16 so blocks are (8,128)-tile friendly and the
    # sin/cos halves split on a sublane-aligned boundary.
    rows_p = ((rows + 15) // 16) * 16
    if rows_p != rows:
        x2 = jnp.pad(x2, ((0, rows_p - rows), (0, 0)))

    tb = _choose_block_rows(rows_p, length)
    grid = (pl.cdiv(rows_p, tb),)

    # Raw random bits (one uint32 per output element).
    bits = jax.random.bits(jax.random.PRNGKey(seed), (rows_p, length),
                           dtype=jnp.uint32)

    out2 = pl.pallas_call(
        _noise_add_kernel,
        out_shape=jax.ShapeDtypeStruct((rows_p, length), jnp.float32),
        grid_spec=pltpu.PrefetchScalarGridSpec(
            num_scalar_prefetch=1,
            grid=grid,
            in_specs=[
                pl.BlockSpec((tb, length), lambda i, s_ref: (i, 0)),  # x
                pl.BlockSpec((tb, length), lambda i, s_ref: (i, 0)),  # bits
            ],
            out_specs=pl.BlockSpec((tb, length), lambda i, s_ref: (i, 0)),
        ),
        compiler_params=pltpu.CompilerParams(
            dimension_semantics=("parallel",),
            vmem_limit_bytes=32 * 1024 * 1024,
        ),
    )(scale, x2, bits)

    if rows_p != rows:
        out2 = out2[:rows]
    return out2.reshape(orig_shape)


if __name__ == "__main__":
    key = jax.random.PRNGKey(0)
    B, F, L = 2, 16, 128  # (batch, n_bins, length)
    x = jax.random.normal(key, (B, F, L), dtype=jnp.float32)
    ratio = 0.05

    out = jax.block_until_ready(gaussian_noise_2d(x, ratio, seed=0))

    # Light sanity checks (distributional; PRNG streams differ from torch).
    assert out.shape == x.shape and out.dtype == jnp.float32
    noise = out - x
    expected_std = float(ratio * jnp.max(x))
    measured_std = float(jnp.std(noise))
    measured_mean = float(jnp.mean(noise))
    assert abs(measured_std - expected_std) < 0.3 * expected_std + 1e-6, (
        measured_std,
        expected_std,
    )
    assert abs(measured_mean) < 0.2 * expected_std + 1e-6, measured_mean

    print("KERNEL_OK")
</pallas_src>

<mosaic_0001>
module attributes {stable_mosaic.version = 11 : i64} {
  func.func @_noise_add_kernel(%arg0: i32, %arg1: memref<1xf32, #tpu.memory_space<smem>>, %arg2: memref<32x128xf32, #tpu.memory_space<vmem>>, %arg3: memref<32x128xi32, #tpu.memory_space<vmem>>, %arg4: memref<32x128xf32, #tpu.memory_space<vmem>>) attributes {dimension_semantics = [#tpu.dimension_semantics<parallel>], iteration_bounds = array<i64: 1>, scalar_prefetch = 1 : i64, scratch_operands = 0 : i64, tpu.core_type = #tpu.core_type<tc>, window_params = [{transform_indices = @transform_0, window_bounds = array<i64: 32, 128>}, {transform_indices = @transform_1, window_bounds = array<i64: 32, 128>}, {transform_indices = @transform_2, window_bounds = array<i64: 32, 128>}]} {
    %c0 = arith.constant 0 : index
    %0 = memref.load %arg1[%c0] : memref<1xf32, #tpu.memory_space<smem>>
    %c0_0 = arith.constant 0 : index
    %c0_1 = arith.constant 0 : index
    %1 = vector.load %arg3[%c0_0, %c0_1] : memref<32x128xi32, #tpu.memory_space<vmem>>, vector<16x128xi32>
    %c8_i32 = arith.constant 8 : i32
    %2 = vector.broadcast %c8_i32 : i32 to vector<16x128xi32>
    %3 = arith.shrui %1, %2 : vector<16x128xi32>
    %4 = arith.sitofp %3 : vector<16x128xi32> to vector<16x128xf32>
    %c16 = arith.constant 16 : index
    %c0_2 = arith.constant 0 : index
    %5 = vector.load %arg3[%c16, %c0_2] : memref<32x128xi32, #tpu.memory_space<vmem>>, vector<16x128xi32>
    %c8_i32_3 = arith.constant 8 : i32
    %6 = vector.broadcast %c8_i32_3 : i32 to vector<16x128xi32>
    %7 = arith.shrui %5, %6 : vector<16x128xi32>
    %8 = arith.sitofp %7 : vector<16x128xi32> to vector<16x128xf32>
    %cst = arith.constant 1.000000e+00 : f32
    %9 = vector.broadcast %cst : f32 to vector<16x128xf32>
    %10 = arith.addf %4, %9 : vector<16x128xf32>
    %cst_4 = arith.constant 5.96046448E-8 : f32
    %11 = vector.broadcast %cst_4 : f32 to vector<16x128xf32>
    %12 = arith.mulf %10, %11 : vector<16x128xf32>
    %cst_5 = arith.constant 5.96046448E-8 : f32
    %13 = vector.broadcast %cst_5 : f32 to vector<16x128xf32>
    %14 = arith.mulf %8, %13 : vector<16x128xf32>
    %15 = math.log %12 : vector<16x128xf32>
    %cst_6 = arith.constant -2.000000e+00 : f32
    %16 = vector.broadcast %cst_6 : f32 to vector<16x128xf32>
    %17 = arith.mulf %16, %15 : vector<16x128xf32>
    %18 = math.sqrt %17 : vector<16x128xf32>
    %cst_7 = arith.constant 6.28318548 : f32
    %19 = vector.broadcast %cst_7 : f32 to vector<16x128xf32>
    %20 = arith.mulf %19, %14 : vector<16x128xf32>
    %21 = math.cos %20 : vector<16x128xf32>
    %22 = arith.mulf %18, %21 : vector<16x128xf32>
    %23 = math.sin %20 : vector<16x128xf32>
    %24 = arith.mulf %18, %23 : vector<16x128xf32>
    %c0_8 = arith.constant 0 : index
    %c0_9 = arith.constant 0 : index
    %25 = vector.load %arg2[%c0_8, %c0_9] : memref<32x128xf32, #tpu.memory_space<vmem>>, vector<16x128xf32>
    %26 = vector.broadcast %0 : f32 to vector<16x128xf32>
    %27 = arith.mulf %22, %26 : vector<16x128xf32>
    %28 = arith.addf %25, %27 : vector<16x128xf32>
    %c0_10 = arith.constant 0 : index
    %c0_11 = arith.constant 0 : index
    %29 = vector.load %arg4[%c0_10, %c0_11] : memref<32x128xf32, #tpu.memory_space<vmem>>, vector<16x128xf32>
    tpu.vector_store %arg4[%c0_10, %c0_11], %28 {strides = array<i32>} : memref<32x128xf32, #tpu.memory_space<vmem>>, vector<16x128xf32>,
    %c16_12 = arith.constant 16 : index
    %c0_13 = arith.constant 0 : index
    %30 = vector.load %arg2[%c16_12, %c0_13] : memref<32x128xf32, #tpu.memory_space<vmem>>, vector<16x128xf32>
    %31 = vector.broadcast %0 : f32 to vector<16x128xf32>
    %32 = arith.mulf %24, %31 : vector<16x128xf32>
    %33 = arith.addf %30, %32 : vector<16x128xf32>
    %c16_14 = arith.constant 16 : index
    %c0_15 = arith.constant 0 : index
    %34 = vector.load %arg4[%c16_14, %c0_15] : memref<32x128xf32, #tpu.memory_space<vmem>>, vector<16x128xf32>
    tpu.vector_store %arg4[%c16_14, %c0_15], %33 {strides = array<i32>} : memref<32x128xf32, #tpu.memory_space<vmem>>, vector<16x128xf32>,
    return
  }
  func.func @transform_0(%arg0: i32, %arg1: memref<1xf32, #tpu.memory_space<smem>>) -> (i32, i32) {
    %c0_i32 = arith.constant 0 : i32
    %c0_i32_0 = arith.constant 0 : i32
    return %arg0, %c0_i32 : i32, i32
  }
  func.func @transform_1(%arg0: i32, %arg1: memref<1xf32, #tpu.memory_space<smem>>) -> (i32, i32) {
    %c0_i32 = arith.constant 0 : i32
    %c0_i32_0 = arith.constant 0 : i32
    return %arg0, %c0_i32 : i32, i32
  }
  func.func @transform_2(%arg0: i32, %arg1: memref<1xf32, #tpu.memory_space<smem>>) -> (i32, i32) {
    %c0_i32 = arith.constant 0 : i32
    %c0_i32_0 = arith.constant 0 : i32
    return %arg0, %c0_i32 : i32, i32
  }
}

</mosaic_0001>

<bundles_post_ra>
// kernel: tpu_custom_call.1
= control target key start
LH: loop header
LB: loop body
LE: loop exit
PB: predicated region body
PF: predicated region fallthrough
CT: control target
= control target key end

     0   :  { %9 = vsyncpa [#allocation5], 0  ;;  %s840_s0 = inlined_call_operand.<no memory space> [shape: f32[1], index: 0, kind: input, shape index: {}]   ;;  %s841_s1 = inlined_call_operand.hbm [shape: f32[32,128], index: 1, kind: input, shape index: {}]   ;;  %s842_s2 = inlined_call_operand.hbm [shape: u32[32,128], index: 2, kind: input, shape index: {}]   ;;  %s843_s3 = inlined_call_operand.hbm [shape: f32[32,128], index: 3, kind: output, shape index: {}]  }
   0x1   :  { %10 = vsyncpa [#allocation8], 0 }
   0x2   :  { %11 = vsyncpa [#allocation6], 0  ;;  %s659_s12 = smov [#allocation4]   ;;  %s587_s16 = scalar_lea.hbm %s841_s1, 512 }
   0x3   :  { %s17_s13 = sshll.u32 %s659_s12, 4  ;;  %p588_p0 = scmp.ne.s32.totalorder %s841_s1, %s587_s16  ;;  %s18_s13 = int_to_ptr.vmem [resolvable:$true] %s17_s13 }
   0x4   :  { %p591_p1 = scmp.lt.u32.totalorder %s587_s16, %s841_s1 }
   0x6   :  { %p593_p2 = pnand %p591_p1, %p588_p0 }
   0x8   :  { %596 = shalt.err (!%p593_p2)
}
   0x9   :  { %s597_s21 = scalar_lea.vmem %s18_s13, 512  ;;  %p602_p4 = scmp.lt.s32.totalorder %s18_s13, %s18_s13 }
   0xa   :  { %p598_p3 = scmp.ne.s32.totalorder %s18_s13, %s597_s21  ;;  %p603_p5 = scmp.lt.s32.totalorder %s597_s21, %s597_s21 }
   0xc   :  { %p604_p6 = por %p603_p5, %p602_p4 }
   0xe   :  { %p605_p7 = pnand %p604_p6, %p598_p3 }
  0x10   :  { %608 = shalt.err (!%p605_p7)
}
  0x11   :  { %s660_s22 = smov 128   ;;  %s661_s23 = smov 8  }
  0x12   :  { %23 = dma.hbm_to_vmem [thread:$0]  %s841_s1, 512, %s18_s13, [#allocation5], %s660_s22, %s660_s22, %s661_s23  }
  0x13   :  { %s662_s26 = smov [#allocation7]   ;;  %s609_s30 = scalar_lea.hbm %s842_s2, 512 }
  0x14   :  { %s29_s27 = sshll.u32 %s662_s26, 4  ;;  %p610_p8 = scmp.ne.s32.totalorder %s842_s2, %s609_s30  ;;  %s30_s27 = int_to_ptr.vmem [resolvable:$true] %s29_s27 }
  0x15   :  { %p613_p9 = scmp.lt.u32.totalorder %s609_s30, %s842_s2 }
  0x17   :  { %p615_p10 = pnand %p613_p9, %p610_p8 }
  0x19   :  { %618 = shalt.err (!%p615_p10)
}
  0x1a   :  { %s619_s8 = scalar_lea.vmem %s30_s27, 512  ;;  %p624_p12 = scmp.lt.s32.totalorder %s30_s27, %s30_s27 }
  0x1b   :  { %p620_p11 = scmp.ne.s32.totalorder %s30_s27, %s619_s8  ;;  %p625_p13 = scmp.lt.s32.totalorder %s619_s8, %s619_s8 }
  0x1d   :  { %p626_p0 = por %p625_p13, %p624_p12 }
  0x1f   :  { %p627_p1 = pnand %p626_p0, %p620_p11 }
  0x21   :  { %630 = shalt.err (!%p627_p1)
}
  0x22   :  { %35 = dma.hbm_to_vmem [thread:$0]  %s842_s2, 512, %s30_s27, [#allocation8], %s660_s22, %s660_s22, %s661_s23  }
  0x23   :  { %653 = dma.done.wait [#allocation5], 512  }
  0x24   :  { %654 = vsyncadd [#allocation5], 4294966784 }
  0x25   :  { %655 = dma.done.wait [#allocation8], 512  }
  0x26   :  { %656 = vsyncadd [#allocation8], 4294966784  ;;  %v49_v0 = vld [vmem:[#allocation7 + $0x10] sm:$0xff]  ;;  %v50_v2 = vld [vmem:[#allocation7 + $0x18] sm:$0xff]  ;;  %v663_v24 = vmov 683565275  }
  0x27   :  { %v51_v1 = vshrl.u32 %v49_v0, 8  ;;  %v52_v3 = vshrl.u32 %v50_v2, 8  ;;  %v664_v26 = vmov 2475754826   ;;  %v665_v28 = vmov 2131351028  }
  0x28   :  { %v43_v31 = vld [vmem:[#allocation7] sm:$0xff]  ;;  %v666_v34 = vmov 2102212464   ;;  %v667_v38 = vmov 920167782  }
  0x29   :  { %v53_v4 = vcvt.s32.f32 %v51_v1  ;;  %v54_v5 = vcvt.s32.f32 %v52_v3  ;;  %v45_v44 = vshrl.u32 %v43_v31, 8  ;;  %v668_v45 = vmov 1326507024  }
  0x2b   :  { %v59_v6 = vmul.f32 5.9604645e-08, %v53_v4  ;;  %v60_v7 = vmul.f32 5.9604645e-08, %v54_v5  ;;  %v47_v4 = vcvt.s32.f32 %v45_v44 }
  0x2d   :  { %v720_v8 = vmul.f32 6.2831855, %v59_v6  ;;  %v722_v9 = vmul.f32 6.2831855, %v60_v7 }
  0x2f   :  { %v86_v10 = vand.u32 2139095040, %v720_v8  ;;  %v189_v12 = vand.u32 2139095040, %v722_v9  ;;  %v83_v15 = vand.u32 2147483647, %v720_v8  ;;  %v186_v60 = vand.u32 2147483647, %v722_v9 }
  0x30   :  { %vm85_vm13 = vcmp.lt.s32.totalorder %v720_v8, 0 }
  0x31   :  { %v87_v11 = vshrl.u32 %v86_v10, 23  ;;  %v190_v14 = vshrl.u32 %v189_v12, 23  ;;  %v90_v18 = vand.u32 8388607, %v83_v15  ;;  %v193_v10 = vand.u32 8388607, %v186_v60 }
  0x32   :  { %vm84_vm14 = vcmp.le.f32.partialorder %v83_v15, 0.7853982 }
  0x33   :  { %v536_v13 = vadd.s32 4294967169, %v87_v11  ;;  %v540_v17 = vadd.s32 4294967169, %v190_v14  ;;  %v91_v30 = vor.u32 8388608, %v90_v18 }
  0x35   :  { %v93_v16 = vadd.s32 1, %v536_v13  ;;  %v196_v20 = vadd.s32 1, %v540_v17  ;;  %v131_v50 = vshll.u32 %v91_v30, 8 }
  0x37   :  { %vm94_vm0 = vcmp.gt.s32.totalorder %v93_v16, 0  ;;  %vm197_vm1 = vcmp.gt.s32.totalorder %v196_v20, 0 }
  0x38   :  { %v95_v19 = vsel %vm94_vm0, %v93_v16, 0  ;;  %v198_v47 = vsel %vm197_vm1, %v196_v20, 0  ;;  %vm789_vm1 = vcmp.le.f32.partialorder %v186_v60, 0.7853982 }
  0x39   :  { %v97_v21 = vand.u32 31, %v95_v19  ;;  %v96_v22 = vshrl.u32 %v95_v19, 5  ;;  %v200_v57 = vand.u32 31, %v198_v47  ;;  %v199_v11 = vshrl.u32 %v198_v47, 5 }
  0x3b   :  { %v98_v23 = vsub.s32 32, %v97_v21  ;;  %v100_v25 = vshll.u32 %v663_v24, %v97_v21  ;;  %v103_v27 = vshll.u32 %v664_v26, %v97_v21  ;;  %v106_v29 = vshll.u32 %v665_v28, %v97_v21 }
  0x3c   :  { %v109_v36 = vshll.u32 %v666_v34, %v97_v21  ;;  %v112_v39 = vshll.u32 %v667_v38, %v97_v21  ;;  %vm115_vm2 = vcmp.lt.s32.totalorder %v96_v22, 1  ;;  %vm118_vm3 = vcmp.lt.s32.totalorder %v96_v22, 4 }
  0x3d   :  { %v101_v32 = vshrl.u32 %v664_v26, %v98_v23  ;;  %v104_v33 = vshrl.u32 %v665_v28, %v98_v23  ;;  %v107_v35 = vshrl.u32 %v666_v34, %v98_v23  ;;  %v99_v37 = vshrl.u32 %v663_v24, %v98_v23 }
  0x3e   :  { %v110_v43 = vshrl.u32 %v667_v38, %v98_v23  ;;  %v113_v46 = vshrl.u32 %v668_v45, %v98_v23  ;;  %vm117_vm4 = vcmp.lt.s32.totalorder %v96_v22, 3  ;;  %vm116_vm5 = vcmp.lt.s32.totalorder %v96_v22, 2 }
  0x3f   :  { %v102_v40 = vor.u32 %v101_v32, %v100_v25  ;;  %v105_v41 = vor.u32 %v104_v33, %v103_v27  ;;  %v108_v42 = vor.u32 %v107_v35, %v106_v29  ;;  %v201_v63 = vsub.s32 32, %v200_v57 }
  0x40   :  { %v111_v48 = vor.u32 %v110_v43, %v109_v36  ;;  %v114_v51 = vor.u32 %v113_v46, %v112_v39  ;;  %v203_v7 = vshll.u32 %v663_v24, %v200_v57  ;;  %v206_v13 = vshll.u32 %v664_v26, %v200_v57 }
  0x41   :  { %v120_v49 = vsel %vm118_vm3, %v108_v42, 2102212464  ;;  %v119_v52 = vsel %vm115_vm2, %v99_v37, %v102_v40  ;;  %v123_v53 = vsel %vm115_vm2, %v102_v40, %v105_v41  ;;  %v127_v56 = vsel %vm115_vm2, %v105_v41, %v108_v42  ;;  %v44_v40 = vld [vmem:[#allocation7 + $0x8] sm:$0xff] }
  0x42   :  { %v121_v54 = vsel %vm117_vm4, %v105_v41, %v120_v49  ;;  %v124_v55 = vsel %vm118_vm3, %v111_v48, 920167782  ;;  %v128_v59 = vsel %vm118_vm3, %v114_v51, 1326507024  ;;  %v204_v12 = vshrl.u32 %v664_v26, %v201_v63 }
  0x43   :  { %v125_v58 = vsel %vm117_vm4, %v108_v42, %v124_v55  ;;  %v129_v62 = vsel %vm117_vm4, %v111_v48, %v128_v59  ;;  %v122_v0 = vsel %vm116_vm5, %v119_v52, %v121_v54  ;;  %v207_v16 = vshrl.u32 %v665_v28, %v201_v63 }
  0x44   :  { %v126_v61 = vsel %vm116_vm5, %v123_v53, %v125_v58  ;;  %v130_v1 = vsel %vm116_vm5, %v127_v56, %v129_v62  ;;  %v138_v14 = vmul.u32 %v131_v50, %v122_v0  ;;  %v209_v17 = vshll.u32 %v665_v28, %v200_v57 }
  0x45   :  { %v736_v2 = vmul.u32.u64.low %v131_v50, %v126_v61  ;;  %v737_v3 = vmul.u32.u64.high %v131_v50, %v126_v61, %v736_v2  ;;  %v740_v5 = vmul.u32.u64.low %v131_v50, %v130_v1  ;;  %v741_v6 = vmul.u32.u64.high %v131_v50, %v130_v1, %v740_v5 }
  0x46   :  { %v210_v18 = vshrl.u32 %v666_v34, %v201_v63  ;;  %v212_v20 = vshll.u32 %v666_v34, %v200_v57  ;;  %v213_v21 = vshrl.u32 %v667_v38, %v201_v63  ;;  %v55_v22 = vadd.f32 1.0, %v47_v4 }
  0x47   :  { %v141_v19 = vadd.s32 1, %v737_v3  ;;  %vm140_vm6 = vc.u32 %v741_v6, %v736_v2  ;;  %v205_v23 = vor.u32 %v204_v12, %v203_v7  ;;  %v208_v25 = vor.u32 %v207_v16, %v206_v13 }
  0x48   :  { %v194_v29 = vor.u32 8388608, %v193_v10  ;;  %v211_v30 = vor.u32 %v210_v18, %v209_v17  ;;  %v214_v31 = vor.u32 %v213_v21, %v212_v20  ;;  %v215_v32 = vshll.u32 %v667_v38, %v200_v57 }
  0x49   :  { %v142_v27 = vsel %vm140_vm6, %v141_v19, %v737_v3  ;;  %v216_v33 = vshrl.u32 %v668_v45, %v201_v63  ;;  %vm218_vm7 = vcmp.lt.s32.totalorder %v199_v11, 1  ;;  %v202_v28 = vshrl.u32 %v663_v24, %v201_v63 }
  0x4a   :  { %v143_v26 = vadd.s32 %v142_v27, %v138_v14  ;;  %vm219_vm8 = vcmp.lt.s32.totalorder %v199_v11, 2  ;;  %vm220_vm9 = vcmp.lt.s32.totalorder %v199_v11, 3  ;;  %vm221_vm10 = vcmp.lt.s32.totalorder %v199_v11, 4 }
  0x4b   :  { %v217_v35 = vor.u32 %v216_v33, %v215_v32  ;;  %v223_v36 = vsel %vm221_vm10, %v211_v30, 2102212464  ;;  %v226_v37 = vsel %vm218_vm7, %v205_v23, %v208_v25  ;;  %v57_v39 = vmul.f32 5.9604645e-08, %v55_v22 }
  0x4c   :  { %v144_v34 = vadd.s32 536870912, %v143_v26  ;;  %v227_v41 = vsel %vm221_vm10, %v214_v31, 920167782  ;;  %v234_v42 = vshll.u32 %v194_v29, 8  ;;  %v230_v38 = vsel %vm218_vm7, %v208_v25, %v211_v30 }
  0x4d   :  { %v228_v44 = vsel %vm220_vm9, %v211_v30, %v227_v41  ;;  %v222_v45 = vsel %vm218_vm7, %v202_v28, %v205_v23  ;;  %v224_v24 = vsel %vm220_vm9, %v208_v25, %v223_v36  ;;  %v231_v47 = vsel %vm221_vm10, %v217_v35, 1326507024 }
  0x4e   :  { %v145_v43 = vshrl.u32 %v144_v34, 30  ;;  %v229_v46 = vsel %vm219_vm8, %v226_v37, %v228_v44  ;;  %v46_v49 = vshrl.u32 %v44_v40, 8  ;;  %v232_v50 = vsel %vm220_vm9, %v214_v31, %v231_v47 }
  0x4f   :  { %571 = vlog2.f32 %v57_v39  ;;  %v233_v51 = vsel %vm219_vm8, %v230_v38, %v232_v50  ;;  %v759_v52 = vmul.u32.u64.low %v234_v42, %v229_v46  ;;  %v760_v53 = vmul.u32.u64.high %v234_v42, %v229_v46, %v759_v52 }
  0x50   :  { %v146_v48 = vshll.u32 %v145_v43, 30  ;;  %v225_v55 = vsel %vm219_vm8, %v222_v45, %v224_v24  ;;  %v763_v56 = vmul.u32.u64.low %v234_v42, %v233_v51  ;;  %v764_v57 = vmul.u32.u64.high %v234_v42, %v233_v51, %v763_v56 }
  0x51   :  { %v241_v59 = vmul.u32 %v234_v42, %v225_v55  ;;  %v244_v61 = vadd.s32 1, %v760_v53  ;;  %v48_v63 = vcvt.s32.f32 %v46_v49  ;;  %v139_v11 = vadd.s32 %v736_v2, %v741_v6 }
  0x52   :  { %v147_v54 = vsub.s32 %v143_v26, %v146_v48  ;;  %vm243_vm11 = vc.u32 %v764_v57, %v759_v52  ;;  %v169_v31 = vsub.s32 4, %v145_v43  ;;  %v242_v37 = vadd.s32 %v759_v52, %v764_v57 }
  0x53   :  { %v245_v1 = vsel %vm243_vm11, %v244_v61, %v760_v53  ;;  %v56_v5 = vadd.f32 1.0, %v48_v63  ;;  %vm188_vm2 = vcmp.lt.s32.totalorder %v722_v9, 0  ;;  %vm175_vm8 = vweird.f32 %v720_v8 }
  0x54   :  { %v149_v58 = vsub.s32 0, %v147_v54  ;;  %v246_v3 = vadd.s32 %v245_v1, %v241_v59  ;;  %v170_v34 = vsel %vm85_vm13, %v169_v31, %v145_v43 }
  0x55   :  { %v58_v18 = vmul.f32 5.9604645e-08, %v56_v5  ;;  %v172_v41 = vsel %vm84_vm14, 0, %v170_v34 }
  0x56   :  { %v537_v62 = vmin.u32 %v149_v58, %v147_v54  ;;  %v247_v10 = vadd.s32 536870912, %v246_v3  ;;  %v384_v48 = vadd.s32 3, %v172_v41  ;;  %v176_v55 = vand.u32 3, %v172_v41 }
  0x57   :  { %573 = vlog2.f32 %v58_v18 }
  0x58   :  { %v151_v0 = vclz %v537_v62  ;;  %v771_v13 = vshrl.u32 %v247_v10, 30  ;;  %v385_v56 = vand.u32 3, %v384_v48  ;;  %vm178_vm4 = vcmp.eq.s32.totalorder %v176_v55, 0 }
  0x59   :  { %v572_v7 = vpop.eup %571  ;;  %vm181_vm5 = vcmp.eq.s32.totalorder %v176_v55, 2  ;;  %vm177_vm9 = vcmp.lt.s32.totalorder %v176_v55, 2 }
  0x5a   :  { %v538_v4 = vadd.s32 4294967294, %v151_v0  ;;  %v62_v19 = vmul.f32 0.6931472, %v572_v7  ;;  %v249_v20 = vshll.u32 %v771_v13, 30  ;;  %v272_v58 = vsub.s32 4, %v771_v13 }
  0x5b   :  { %vm390_vm6 = vcmp.eq.s32.totalorder %v385_v56, 2  ;;  %vm387_vm7 = vcmp.eq.s32.totalorder %v385_v56, 0  ;;  %vm386_vm10 = vcmp.lt.s32.totalorder %v385_v56, 2 }
  0x5c   :  { %vm539_vm12 = vcmp.lt.s32.totalorder %v538_v4, 0  ;;  %v250_v23 = vsub.s32 %v246_v3, %v249_v20  ;;  %v774_v29 = vmul.f32 -2.0, %v62_v19 }
  0x5d   :  { %v154_v12 = vsel %vm539_vm12, 0, %v538_v4  ;;  %v273_v4 = vsel %vm188_vm2, %v272_v58, %v771_v13 }
  0x5e   :  { %v155_v14 = vsub.s32 32, %v154_v12  ;;  %v156_v16 = vshll.u32 %v147_v54, %v154_v12  ;;  %v159_v17 = vsub.s32 4294967266, %v154_v12  ;;  %v252_v2 = vsub.s32 0, %v250_v23 }
  0x5f   :  { %575 = vrsqrt.f32 %v774_v29  ;;  %vm69_vm0 = vcmp.eq.f32.partialorder %v774_v29, inf  ;;  %vm71_vm3 = vcmp.eq.f32.partialorder %v774_v29, 0.0  ;;  %v72_v61 = vand.u32 2147483648, %v774_v29 }
  0x60   :  { %v157_v21 = vshrl.u32 %v139_v11, %v155_v14  ;;  %v160_v22 = vadd.s32 127, %v159_v17  ;;  %v541_v26 = vmin.u32 %v252_v2, %v250_v23  ;;  %v510_v2 = vld [vmem:[#allocation4 + $0x10] sm:$0xff] }
  0x61   :  { %v574_v39 = vpop.eup %573 }
  0x62   :  { %v158_v25 = vor.u32 %v157_v21, %v156_v16  ;;  %v161_v27 = vshll.u32 %v160_v22, 23  ;;  %v254_v33 = vclz %v541_v26  ;;  %v64_v43 = vmul.f32 0.6931472, %v574_v39 }
  0x63   :  { %v275_v16 = vsel %vm789_vm1, 0, %v273_v4  ;;  %v503_v21 = vstv %s840_s0  ;;  %s669_s0 = smov [#allocation9]  }
  0x64   :  { %v162_v6 = vor.u32 4788187, %v161_v27  ;;  %v165_v30 = vcvt.s32.f32 %v158_v25  ;;  %v542_v35 = vadd.s32 4294967294, %v254_v33  ;;  %v782_v51 = vmul.f32 -2.0, %v64_v43  ;;  %s523_s11 = sshll.u32 %s669_s0, 4  ;;  %s524_s11 = int_to_ptr.vmem [resolvable:$true] %s523_s11 }
  0x65   :  { %v488_v27 = vadd.s32 3, %v275_v16  ;;  %s631_s12 = scalar_lea.vmem %s524_s11, 512  ;;  %p636_p3 = scmp.lt.s32.totalorder %s524_s11, %s524_s11 }
  0x66   :  { %v163_v32 = vand.u32 2147483647, %v162_v6  ;;  %vm543_vm15 = vcmp.lt.s32.totalorder %v542_v35, 0  ;;  %vm76_vm11 = vcmp.eq.f32.partialorder %v782_v51, inf  ;;  %vm78_vm12 = vcmp.eq.f32.partialorder %v782_v51, 0.0  ;;  %p632_p2 = scmp.ne.s32.totalorder %s524_s11, %s631_s12  ;;  %p637_p4 = scmp.lt.s32.totalorder %s631_s12, %s631_s12 }
  0x67   :  { %v257_v42 = vsel %vm543_vm15, 0, %v542_v35  ;;  %v79_v35 = vand.u32 2147483648, %v782_v51 }
  0x68   :  { %v166_v28 = vmul.f32 %v165_v30, %v163_v32  ;;  %v258_v38 = vsub.s32 32, %v257_v42  ;;  %v259_v45 = vshll.u32 %v250_v23, %v257_v42  ;;  %v262_v24 = vsub.s32 4294967266, %v257_v42  ;;  %p638_p5 = por %p637_p4, %p636_p3 }
  0x69   :  { %v576_v15 = vpop.eup %575  ;;  %v279_v32 = vand.u32 3, %v275_v16 }
  0x6a   :  { %v167_v36 = vxor.u32 2147483648, %v166_v28  ;;  %v260_v46 = vshrl.u32 %v242_v37, %v258_v38  ;;  %v263_v47 = vadd.s32 127, %v262_v24  ;;  %v68_v54 = vmul.f32 %v576_v15, %v774_v29  ;;  %p639_p6 = pnand %p638_p5, %p632_p2 }
  0x6b   :  { %vm281_vm15 = vcmp.eq.s32.totalorder %v279_v32, 0 }
  0x6c   :  { %v168_v40 = vsel %vm85_vm13, %v167_v36, %v166_v28  ;;  %v261_v49 = vor.u32 %v260_v46, %v259_v45  ;;  %v264_v50 = vshll.u32 %v263_v47, 23  ;;  %v70_v0 = vsel %vm69_vm0, %v774_v29, %v68_v54  ;;  %v501_v29 = vld [vmem:[#allocation4] sm:$0xff] }
  0x6d   :  { %v171_v44 = vsel %vm84_vm14, %v720_v8, %v168_v40  ;;  %v73_v7 = vsel %vm71_vm3, %v72_v61, %v70_v0  ;;  %v489_v28 = vand.u32 3, %v488_v27  ;;  %vm284_vm13 = vcmp.eq.s32.totalorder %v279_v32, 2 }
  0x6e   :  { %577 = vcosq.f32 %v171_v44  ;;  %v265_v52 = vor.u32 4788187, %v264_v50  ;;  %v268_v53 = vcvt.s32.f32 %v261_v49  ;;  %vm278_vm3 = vweird.f32 %v722_v9  ;;  %v502_v49 = vld [vmem:[#allocation4 + $0x8] sm:$0xff]  ;;  %v511_v50 = vld [vmem:[#allocation4 + $0x18] sm:$0xff] }
  0x6f   :  { %579 = vsinq.f32 %v171_v44  ;;  %vm494_vm14 = vcmp.eq.s32.totalorder %v489_v28, 2  ;;  %vm491_vm0 = vcmp.eq.s32.totalorder %v489_v28, 0 }
  0x70   :  { %v266_v57 = vand.u32 2147483647, %v265_v52  ;;  %581 = vrsqrt.f32 %v782_v51 }
  0x72   :  { %v269_v62 = vmul.f32 %v268_v53, %v266_v57 }
  0x74   :  { %v270_v3 = vxor.u32 2147483648, %v269_v62 }
  0x76   :  { %v271_v11 = vsel %vm188_vm2, %v270_v3, %v269_v62  ;;  %vm490_vm2 = vcmp.lt.s32.totalorder %v489_v28, 2 }
  0x77   :  { %v274_v13 = vsel %vm789_vm1, %v722_v9, %v271_v11  ;;  %vm280_vm1 = vcmp.lt.s32.totalorder %v279_v32, 2 }
  0x78   :  { %v578_v63 = vpop.eup %577  ;;  %583 = vcosq.f32 %v274_v13 }
  0x79   :  { %v580_v1 = vpop.eup %579  ;;  %v182_v60 = vxor.u32 2147483648, %v578_v63  ;;  %585 = vsinq.f32 %v274_v13 }
  0x7a   :  { %v179_v5 = vxor.u32 2147483648, %v580_v1  ;;  %v582_v6 = vpop.eup %581 }
  0x7b   :  { %v183_v10 = vsel %vm181_vm5, %v182_v60, %v580_v1  ;;  %v392_v12 = vsel %vm390_vm6, %v182_v60, %v580_v1  ;;  %v75_v34 = vmul.f32 %v582_v6, %v782_v51 }
  0x7c   :  { %v180_v14 = vsel %vm178_vm4, %v578_v63, %v179_v5  ;;  %v389_v17 = vsel %vm387_vm7, %v578_v63, %v179_v5 }
  0x7d   :  { %v184_v18 = vsel %vm177_vm9, %v180_v14, %v183_v10  ;;  %v393_v19 = vsel %vm386_vm10, %v389_v17, %v392_v12  ;;  %v77_v37 = vsel %vm76_vm11, %v782_v51, %v75_v34 }
  0x7e   :  { %v185_v20 = vsel %vm175_vm8, nan, %v184_v18  ;;  %v394_v22 = vsel %vm175_vm8, nan, %v393_v19  ;;  %v80_v44 = vsel %vm78_vm12, %v79_v35, %v77_v37 }
  0x7f   :  { %v289_v23 = vmul.f32 %v185_v20, %v73_v7  ;;  %v499_v25 = vmul.f32 %v394_v22, %v73_v7 }
  0x81   :  { %v504_v30 = vmul.f32 %v503_v21, %v289_v23  ;;  %v512_v31 = vmul.f32 %v503_v21, %v499_v25 }
  0x82   :  { %v584_v8 = vpop.eup %583 }
  0x83   :  { %v506_v26 = vadd.f32 %v504_v30, %v501_v29  ;;  %v514_v33 = vadd.f32 %v512_v31, %v510_v2  ;;  %v586_v36 = vpop.eup %585  ;;  %v285_v39 = vxor.u32 2147483648, %v584_v8 }
  0x84   :  { %v282_v40 = vxor.u32 2147483648, %v586_v36 }
  0x85   :  { %508 = vst [vmem:[#allocation9] sm:$0xff] %v506_v26  ;;  %516 = vst [vmem:[#allocation9 + $0x10] sm:$0xff] %v514_v33  ;;  %v286_v41 = vsel %vm284_vm13, %v285_v39, %v586_v36  ;;  %v496_v42 = vsel %vm494_vm14, %v285_v39, %v586_v36 }
  0x86   :  { %v283_v38 = vsel %vm281_vm15, %v584_v8, %v282_v40  ;;  %v493_v45 = vsel %vm491_vm0, %v584_v8, %v282_v40 }
  0x87   :  { %v287_v24 = vsel %vm280_vm1, %v283_v38, %v286_v41  ;;  %v497_v43 = vsel %vm490_vm2, %v493_v45, %v496_v42 }
  0x88   :  { %v288_v46 = vsel %vm278_vm3, nan, %v287_v24  ;;  %v498_v47 = vsel %vm278_vm3, nan, %v497_v43 }
  0x89   :  { %v290_v48 = vmul.f32 %v288_v46, %v80_v44  ;;  %v500_v15 = vmul.f32 %v498_v47, %v80_v44 }
  0x8b   :  { %v505_v51 = vmul.f32 %v503_v21, %v290_v48  ;;  %v513_v52 = vmul.f32 %v503_v21, %v500_v15 }
  0x8d   :  { %v507_v53 = vadd.f32 %v505_v51, %v502_v49  ;;  %v515_v54 = vadd.f32 %v513_v52, %v511_v50 }
  0x8f   :  { %509 = vst [vmem:[#allocation9 + $0x8] sm:$0xff] %v507_v53  ;;  %517 = vst [vmem:[#allocation9 + $0x18] sm:$0xff] %v515_v54 }
  0x90   :  { %642 = shalt.err (!%p639_p6)
}
  0x91   :  { %s643_s15 = scalar_lea.hbm %s843_s3, 512 }
  0x92   :  { %p644_p7 = scmp.ne.s32.totalorder %s843_s3, %s643_s15  ;;  %p647_p8 = scmp.lt.u32.totalorder %s643_s15, %s843_s3 }
  0x94   :  { %p649_p9 = pnand %p647_p8, %p644_p7 }
  0x96   :  { %652 = shalt.err (!%p649_p9)
}
  0x97   :  { %529 = dma.vmem_to_hbm [thread:$0]  %s524_s11, 512, %s843_s3, [#allocation6], %s660_s22, %s660_s22, %s661_s23  }
  0x98   :  { %657 = dma.done.wait [#allocation6], 512  }
  0x99   :  { %658 = vsyncadd [#allocation6], 4294966784 }
  0x9a   :  { %533 = vsyncpa [#allocation5], 1 }
  0x9b   :  { %534 = vsyncpa [#allocation8], 1 }
  0x9c   :  { %535 = vsyncpa [#allocation6], 1 }

</bundles_post_ra>
